<compile_context>
chip_gen: v7x
topology: tpu7x:2x2x1
jax: 0.10.0
libtpu: 0.0.40
codegen_flags: <defaults>
</compile_context>

<pallas_src>
import jax
import jax.numpy as jnp
from jax import lax
from jax.experimental import pallas as pl
from jax.experimental.pallas import tpu as pltpu

attr_dim = 5
attr_num = 18
hidden_dim = 100
user_emb_dim = attr_num                       # 18
in_dim = attr_num * attr_dim + user_emb_dim   # 108
vocab = attr_num * 2                          # 36

HID_P = 128                     # hidden width padded to a lane multiple
OUT_P = 128                     # logit width padded to a lane multiple
GROUP = 3                       # attr slots fused per one-hot window (3*36=108 <= 128)
N_GROUPS = attr_num // GROUP    # 6
GRP_K = 128                     # contraction width per group (one lane tile)


# ----------------------------------------------------------------------------
# Parameter init (torch semantics) + one-time packing into kernel layout.
# ----------------------------------------------------------------------------
def _xavier_normal(key, shape):
    # nn.init.xavier_normal_: std = sqrt(2 / (fan_in + fan_out)),
    # fan_in = shape[-1], fan_out = shape[-2] (torch convention).
    fan_out, fan_in = shape[-2], shape[-1]
    std = jnp.sqrt(2.0 / (fan_in + fan_out))
    return std * jax.random.normal(key, shape, dtype=jnp.float32)


def init_discriminator_params(key):
    ks = jax.random.split(key, 7)
    emb_w = _xavier_normal(ks[0], (vocab, attr_dim))              # (36, 5)
    # Linear weights in torch layout (out, in); transpose to (in, out).
    w1 = _xavier_normal(ks[1], (hidden_dim, in_dim)).T            # (108, 100)
    b1 = _xavier_normal(ks[2], (1, hidden_dim))                   # (1, 100)
    w2 = _xavier_normal(ks[3], (hidden_dim, hidden_dim)).T        # (100, 100)
    b2 = _xavier_normal(ks[4], (1, hidden_dim))                   # (1, 100)
    w3 = _xavier_normal(ks[5], (user_emb_dim, hidden_dim)).T      # (100, 18)
    b3 = _xavier_normal(ks[6], (1, user_emb_dim))                 # (1, 18)
    return dict(emb_w=emb_w, w1=w1, b1=b1, w2=w2, b2=b2, w3=w3, b3=b3)


def _pad_last(x, n):
    return jnp.pad(x, [(0, 0)] * (x.ndim - 1) + [(0, n - x.shape[-1])])


def _pad2(x, r, c):
    return jnp.pad(x, [(0, r - x.shape[0]), (0, c - x.shape[1])])


def pack_discriminator_params(params):
    """One-time pack: fold embedding into l1, group 3 slots per 128-lane window,
    pad everything to (8,128)-aligned shapes, cast matmul weights to bf16."""
    emb_w = params["emb_w"].astype(jnp.float32)                   # (36, 5)
    w1 = params["w1"].astype(jnp.float32)                         # (108, 100)

    # Fold the embedding gather into l1.  For attribute slot a:
    #   emb_w[attr_id[:, a]] @ W1[5a:5a+5, :]
    #     == one_hot_36(attr_id[:, a]) @ (emb_w @ W1[5a:5a+5, :])
    w1_attr = w1[:attr_num * attr_dim].reshape(attr_num, attr_dim, hidden_dim)
    folded = jnp.einsum("vd,adh->avh", emb_w, w1_attr)            # (18, 36, 100)

    # Pack GROUP=3 slots per 128-lane contraction window: slot j of group g
    # occupies rows [36j, 36(j+1)); rows 108..127 / cols 100..127 are zero.
    wg = folded.reshape(N_GROUPS, GROUP * vocab, hidden_dim)      # (6, 108, 100)
    wg = jnp.pad(wg, ((0, 0), (0, GRP_K - GROUP * vocab),
                      (0, HID_P - hidden_dim))).astype(jnp.bfloat16)  # (6,128,128)

    w1u = _pad_last(w1[attr_num * attr_dim:], HID_P).astype(jnp.bfloat16)  # (18, 128)
    w2p = _pad2(params["w2"], HID_P, HID_P).astype(jnp.bfloat16)  # (128, 128)
    w3p = _pad2(params["w3"], HID_P, OUT_P).astype(jnp.bfloat16)  # (128, 128)
    b1p = _pad_last(params["b1"], HID_P).astype(jnp.float32)      # (1, 128)
    b2p = _pad_last(params["b2"], HID_P).astype(jnp.float32)
    b3p = _pad_last(params["b3"], OUT_P).astype(jnp.float32)
    return dict(wg=wg, w1u=w1u, b1=b1p, w2=w2p, b2=b2p, w3=w3p, b3=b3p)


# ----------------------------------------------------------------------------
# Pallas kernel: fused gather + 3-layer MLP, everything lane-dense (128 wide).
# ----------------------------------------------------------------------------
def _disc_kernel(attr_id_ref, user_emb_ref, wg_ref, w1u_ref, b1_ref,
                 w2_ref, b2_ref, w3_ref, b3_ref, logit_ref):
    tb = attr_id_ref.shape[0]
    lane = lax.broadcasted_iota(jnp.int32, (tb, GRP_K), 1)        # (TB, 128)

    # l1: user_emb part ((TB,18)@(18,128)) + 6 grouped gather+matmul windows.
    h1 = jnp.dot(user_emb_ref[...].astype(jnp.bfloat16), w1u_ref[...],
                 preferred_element_type=jnp.float32)              # (TB, 128) f32
    for g in range(N_GROUPS):  # static unroll
        s = g * GROUP
        # Multi-hot over one 128-lane window: slot j occupies lanes
        # [36j, 36(j+1)); slot ranges are disjoint, so the sum is a multi-hot.
        mh = (attr_id_ref[:, s:s + 1] == lane).astype(jnp.float32)
        for j in range(1, GROUP):
            mh = mh + (attr_id_ref[:, s + j:s + j + 1] + j * vocab
                       == lane).astype(jnp.float32)
        h1 = h1 + jnp.dot(mh.astype(jnp.bfloat16), wg_ref[g],
                          preferred_element_type=jnp.float32)
    o1 = jnp.tanh(h1 + b1_ref[...])                               # (TB, 128)

    o2 = jnp.tanh(jnp.dot(o1.astype(jnp.bfloat16), w2_ref[...],
                          preferred_element_type=jnp.float32) + b2_ref[...])
    logit_ref[...] = (jnp.dot(o2.astype(jnp.bfloat16), w3_ref[...],
                              preferred_element_type=jnp.float32) + b3_ref[...])


def discriminator_forward(packed, attr_id, user_emb, *, block_rows=1024):
    """attr_id: (B, 18) int, user_emb: (B, 18) float -> (d_prob, d_logit)."""
    attr_id = attr_id.astype(jnp.int32)
    user_emb = user_emb.astype(jnp.float32)
    B = attr_id.shape[0]
    tb = min(block_rows, B)

    row_spec = lambda w: pl.BlockSpec((tb, w), lambda i: (i, 0))
    const_spec = lambda shape: pl.BlockSpec(shape, lambda i, _s=shape: (0,) * len(_s))

    logit_p = pl.pallas_call(
        _disc_kernel,
        out_shape=jax.ShapeDtypeStruct((B, OUT_P), jnp.float32),
        grid=(pl.cdiv(B, tb),),
        in_specs=[
            row_spec(attr_num),                     # attr_id  (TB, 18) i32
            row_spec(user_emb_dim),                 # user_emb (TB, 18) f32
            const_spec((N_GROUPS, GRP_K, HID_P)),   # wg   (6, 128, 128) bf16
            const_spec((user_emb_dim, HID_P)),      # w1u  (18, 128) bf16
            const_spec((1, HID_P)),                 # b1
            const_spec((HID_P, HID_P)),             # w2
            const_spec((1, HID_P)),                 # b2
            const_spec((HID_P, OUT_P)),             # w3
            const_spec((1, OUT_P)),                 # b3
        ],
        out_specs=row_spec(OUT_P),
        compiler_params=pltpu.CompilerParams(
            dimension_semantics=("parallel",)),
    )(attr_id, user_emb, packed["wg"], packed["w1u"], packed["b1"],
      packed["w2"], packed["b2"], packed["w3"], packed["b3"])

    d_logit = logit_p[:, :user_emb_dim]
    d_prob = jax.nn.sigmoid(d_logit)   # cheap; fuses with the slice in XLA
    return d_prob, d_logit


# ----------------------------------------------------------------------------
# References for correctness checking.
# ----------------------------------------------------------------------------
def _reference_forward(params, attr_id, user_emb):
    """Exact torch-semantics reference in f32."""
    attr_id = attr_id.astype(jnp.int32)
    attr_present = jnp.take(params["emb_w"], attr_id, axis=0)
    attr_feat = attr_present.reshape(attr_id.shape[0], attr_num * attr_dim)
    emb = jnp.concatenate([attr_feat, user_emb], axis=1).astype(jnp.float32)
    o1 = jnp.tanh(emb @ params["w1"] + params["b1"])
    o2 = jnp.tanh(o1 @ params["w2"] + params["b2"])
    logit = o2 @ params["w3"] + params["b3"]
    return jax.nn.sigmoid(logit), logit


def _matched_reference_logit(packed, attr_id, user_emb):
    """Same bf16-rounded-operand / f32-accumulation math as the kernel."""
    f32 = lambda x: x.astype(jnp.float32)
    ids = attr_id.astype(jnp.int32)
    lane = jnp.arange(GRP_K, dtype=jnp.int32)[None, :]
    h1 = f32(user_emb.astype(jnp.bfloat16)) @ f32(packed["w1u"])
    for g in range(N_GROUPS):
        s = g * GROUP
        mh = (ids[:, s:s + 1] == lane).astype(jnp.float32)
        for j in range(1, GROUP):
            mh = mh + (ids[:, s + j:s + j + 1] + j * vocab == lane).astype(jnp.float32)
        h1 = h1 + mh @ f32(packed["wg"][g])
    o1 = jnp.tanh(h1 + packed["b1"])
    o2 = jnp.tanh(f32(o1.astype(jnp.bfloat16)) @ f32(packed["w2"]) + packed["b2"])
    logit = f32(o2.astype(jnp.bfloat16)) @ f32(packed["w3"]) + packed["b3"]
    return logit[:, :user_emb_dim]


if __name__ == "__main__":
    key = jax.random.PRNGKey(0)
    k_params, k_id, k_emb = jax.random.split(key, 3)

    params = init_discriminator_params(k_params)
    packed = pack_discriminator_params(params)

    B = 4
    attr_id = jax.random.randint(k_id, (B, attr_num), 0, vocab, dtype=jnp.int32)
    user_emb = jax.random.normal(k_emb, (B, user_emb_dim), dtype=jnp.float32)

    fwd = jax.jit(discriminator_forward)
    d_prob, d_logit = fwd(packed, attr_id, user_emb)
    jax.block_until_ready((d_prob, d_logit))

    assert d_prob.shape == (B, user_emb_dim) and d_logit.shape == (B, user_emb_dim)

    # Tight check vs. a precision-matched (bf16 operands, f32 accum) reference.
    matched_logit = _matched_reference_logit(packed, attr_id, user_emb)
    assert jnp.allclose(d_logit, matched_logit, atol=1e-3, rtol=1e-3), \
        float(jnp.max(jnp.abs(d_logit - matched_logit)))

    # Semantic check vs. the exact f32 torch-style reference (bf16-level tol).
    ref_prob, ref_logit = _reference_forward(params, attr_id, user_emb)
    assert jnp.allclose(d_logit, ref_logit, atol=5e-2, rtol=5e-2), \
        float(jnp.max(jnp.abs(d_logit - ref_logit)))
    assert jnp.allclose(d_prob, ref_prob, atol=2e-2, rtol=2e-2)

    print("KERNEL_OK")
</pallas_src>

<mosaic_0001>
module attributes {stable_mosaic.version = 11 : i64} {
  func.func @_disc_kernel(%arg0: i32, %arg1: memref<4x18xi32, #tpu.memory_space<vmem>>, %arg2: memref<4x18xf32, #tpu.memory_space<vmem>>, %arg3: memref<6x128x128xbf16, #tpu.memory_space<vmem>>, %arg4: memref<18x128xbf16, #tpu.memory_space<vmem>>, %arg5: memref<1x128xf32, #tpu.memory_space<vmem>>, %arg6: memref<128x128xbf16, #tpu.memory_space<vmem>>, %arg7: memref<1x128xf32, #tpu.memory_space<vmem>>, %arg8: memref<128x128xbf16, #tpu.memory_space<vmem>>, %arg9: memref<1x128xf32, #tpu.memory_space<vmem>>, %arg10: memref<4x128xf32, #tpu.memory_space<vmem>>) attributes {dimension_semantics = [#tpu.dimension_semantics<parallel>], iteration_bounds = array<i64: 1>, scalar_prefetch = 0 : i64, scratch_operands = 0 : i64, tpu.core_type = #tpu.core_type<tc>, window_params = [{transform_indices = @transform_0, window_bounds = array<i64: 4, 18>}, {transform_indices = @transform_1, window_bounds = array<i64: 4, 18>}, {pipeline_mode = #tpu.pipeline_mode<synchronous>, transform_indices = @transform_2, window_bounds = array<i64: 6, 128, 128>}, {pipeline_mode = #tpu.pipeline_mode<synchronous>, transform_indices = @transform_3, window_bounds = array<i64: 18, 128>}, {pipeline_mode = #tpu.pipeline_mode<synchronous>, transform_indices = @transform_4, window_bounds = array<i64: 1, 128>}, {pipeline_mode = #tpu.pipeline_mode<synchronous>, transform_indices = @transform_5, window_bounds = array<i64: 128, 128>}, {pipeline_mode = #tpu.pipeline_mode<synchronous>, transform_indices = @transform_6, window_bounds = array<i64: 1, 128>}, {pipeline_mode = #tpu.pipeline_mode<synchronous>, transform_indices = @transform_7, window_bounds = array<i64: 128, 128>}, {pipeline_mode = #tpu.pipeline_mode<synchronous>, transform_indices = @transform_8, window_bounds = array<i64: 1, 128>}, {transform_indices = @transform_9, window_bounds = array<i64: 4, 128>}]} {
    %0 = tpu.iota {dimensions = array<i32: 1>} : vector<4x128xi32>
    %c0 = arith.constant 0 : index
    %c0_0 = arith.constant 0 : index
    %1 = vector.load %arg2[%c0, %c0_0] : memref<4x18xf32, #tpu.memory_space<vmem>>, vector<4x18xf32>
    %2 = arith.truncf %1 : vector<4x18xf32> to vector<4x18xbf16>
    %c0_1 = arith.constant 0 : index
    %c0_2 = arith.constant 0 : index
    %3 = vector.load %arg4[%c0_1, %c0_2] : memref<18x128xbf16, #tpu.memory_space<vmem>>, vector<18x128xbf16>
    %cst = arith.constant dense<0.000000e+00> : vector<4x128xf32>
    %4 = tpu.matmul %2, %3, %cst {dimension_numbers = #tpu.dot_dimension_numbers<[1], [0], [0], [1], [0, 0, 1, 1], [], []>} : vector<4x18xbf16>, vector<18x128xbf16>, vector<4x128xf32> -> vector<4x128xf32>
    %c0_3 = arith.constant 0 : index
    %c0_4 = arith.constant 0 : index
    %5 = vector.load %arg1[%c0_3, %c0_4] : memref<4x18xi32, #tpu.memory_space<vmem>>, vector<4x1xi32>
    %6 = vector.broadcast %5 : vector<4x1xi32> to vector<4x128xi32>
    %7 = arith.cmpi eq, %6, %0 : vector<4x128xi32>
    %8 = arith.extui %7 : vector<4x128xi1> to vector<4x128xi32>
    %9 = arith.sitofp %8 : vector<4x128xi32> to vector<4x128xf32>
    %c0_5 = arith.constant 0 : index
    %c1 = arith.constant 1 : index
    %10 = vector.load %arg1[%c0_5, %c1] : memref<4x18xi32, #tpu.memory_space<vmem>>, vector<4x1xi32>
    %c36_i32 = arith.constant 36 : i32
    %11 = vector.broadcast %c36_i32 : i32 to vector<4x1xi32>
    %12 = arith.addi %10, %11 : vector<4x1xi32>
    %13 = vector.broadcast %12 : vector<4x1xi32> to vector<4x128xi32>
    %14 = arith.cmpi eq, %13, %0 : vector<4x128xi32>
    %15 = arith.extui %14 : vector<4x128xi1> to vector<4x128xi32>
    %16 = arith.sitofp %15 : vector<4x128xi32> to vector<4x128xf32>
    %17 = arith.addf %9, %16 : vector<4x128xf32>
    %c0_6 = arith.constant 0 : index
    %c2 = arith.constant 2 : index
    %18 = vector.load %arg1[%c0_6, %c2] : memref<4x18xi32, #tpu.memory_space<vmem>>, vector<4x1xi32>
    %c72_i32 = arith.constant 72 : i32
    %19 = vector.broadcast %c72_i32 : i32 to vector<4x1xi32>
    %20 = arith.addi %18, %19 : vector<4x1xi32>
    %21 = vector.broadcast %20 : vector<4x1xi32> to vector<4x128xi32>
    %22 = arith.cmpi eq, %21, %0 : vector<4x128xi32>
    %23 = arith.extui %22 : vector<4x128xi1> to vector<4x128xi32>
    %24 = arith.sitofp %23 : vector<4x128xi32> to vector<4x128xf32>
    %25 = arith.addf %17, %24 : vector<4x128xf32>
    %26 = arith.truncf %25 : vector<4x128xf32> to vector<4x128xbf16>
    %c0_7 = arith.constant 0 : index
    %c0_8 = arith.constant 0 : index
    %c0_9 = arith.constant 0 : index
    %27 = vector.load %arg3[%c0_7, %c0_8, %c0_9] : memref<6x128x128xbf16, #tpu.memory_space<vmem>>, vector<1x128x128xbf16>
    %28 = vector.shape_cast %27 : vector<1x128x128xbf16> to vector<128x128xbf16>
    %cst_10 = arith.constant dense<0.000000e+00> : vector<4x128xf32>
    %29 = tpu.matmul %26, %28, %cst_10 {dimension_numbers = #tpu.dot_dimension_numbers<[1], [0], [0], [1], [0, 0, 1, 1], [], []>} : vector<4x128xbf16>, vector<128x128xbf16>, vector<4x128xf32> -> vector<4x128xf32>
    %30 = arith.addf %4, %29 : vector<4x128xf32>
    %c0_11 = arith.constant 0 : index
    %c3 = arith.constant 3 : index
    %31 = vector.load %arg1[%c0_11, %c3] : memref<4x18xi32, #tpu.memory_space<vmem>>, vector<4x1xi32>
    %32 = vector.broadcast %31 : vector<4x1xi32> to vector<4x128xi32>
    %33 = arith.cmpi eq, %32, %0 : vector<4x128xi32>
    %34 = arith.extui %33 : vector<4x128xi1> to vector<4x128xi32>
    %35 = arith.sitofp %34 : vector<4x128xi32> to vector<4x128xf32>
    %c0_12 = arith.constant 0 : index
    %c4 = arith.constant 4 : index
    %36 = vector.load %arg1[%c0_12, %c4] : memref<4x18xi32, #tpu.memory_space<vmem>>, vector<4x1xi32>
    %c36_i32_13 = arith.constant 36 : i32
    %37 = vector.broadcast %c36_i32_13 : i32 to vector<4x1xi32>
    %38 = arith.addi %36, %37 : vector<4x1xi32>
    %39 = vector.broadcast %38 : vector<4x1xi32> to vector<4x128xi32>
    %40 = arith.cmpi eq, %39, %0 : vector<4x128xi32>
    %41 = arith.extui %40 : vector<4x128xi1> to vector<4x128xi32>
    %42 = arith.sitofp %41 : vector<4x128xi32> to vector<4x128xf32>
    %43 = arith.addf %35, %42 : vector<4x128xf32>
    %c0_14 = arith.constant 0 : index
    %c5 = arith.constant 5 : index
    %44 = vector.load %arg1[%c0_14, %c5] : memref<4x18xi32, #tpu.memory_space<vmem>>, vector<4x1xi32>
    %c72_i32_15 = arith.constant 72 : i32
    %45 = vector.broadcast %c72_i32_15 : i32 to vector<4x1xi32>
    %46 = arith.addi %44, %45 : vector<4x1xi32>
    %47 = vector.broadcast %46 : vector<4x1xi32> to vector<4x128xi32>
    %48 = arith.cmpi eq, %47, %0 : vector<4x128xi32>
    %49 = arith.extui %48 : vector<4x128xi1> to vector<4x128xi32>
    %50 = arith.sitofp %49 : vector<4x128xi32> to vector<4x128xf32>
    %51 = arith.addf %43, %50 : vector<4x128xf32>
    %52 = arith.truncf %51 : vector<4x128xf32> to vector<4x128xbf16>
    %c1_16 = arith.constant 1 : index
    %c0_17 = arith.constant 0 : index
    %c0_18 = arith.constant 0 : index
    %53 = vector.load %arg3[%c1_16, %c0_17, %c0_18] : memref<6x128x128xbf16, #tpu.memory_space<vmem>>, vector<1x128x128xbf16>
    %54 = vector.shape_cast %53 : vector<1x128x128xbf16> to vector<128x128xbf16>
    %cst_19 = arith.constant dense<0.000000e+00> : vector<4x128xf32>
    %55 = tpu.matmul %52, %54, %cst_19 {dimension_numbers = #tpu.dot_dimension_numbers<[1], [0], [0], [1], [0, 0, 1, 1], [], []>} : vector<4x128xbf16>, vector<128x128xbf16>, vector<4x128xf32> -> vector<4x128xf32>
    %56 = arith.addf %30, %55 : vector<4x128xf32>
    %c0_20 = arith.constant 0 : index
    %c6 = arith.constant 6 : index
    %57 = vector.load %arg1[%c0_20, %c6] : memref<4x18xi32, #tpu.memory_space<vmem>>, vector<4x1xi32>
    %58 = vector.broadcast %57 : vector<4x1xi32> to vector<4x128xi32>
    %59 = arith.cmpi eq, %58, %0 : vector<4x128xi32>
    %60 = arith.extui %59 : vector<4x128xi1> to vector<4x128xi32>
    %61 = arith.sitofp %60 : vector<4x128xi32> to vector<4x128xf32>
    %c0_21 = arith.constant 0 : index
    %c7 = arith.constant 7 : index
    %62 = vector.load %arg1[%c0_21, %c7] : memref<4x18xi32, #tpu.memory_space<vmem>>, vector<4x1xi32>
    %c36_i32_22 = arith.constant 36 : i32
    %63 = vector.broadcast %c36_i32_22 : i32 to vector<4x1xi32>
    %64 = arith.addi %62, %63 : vector<4x1xi32>
    %65 = vector.broadcast %64 : vector<4x1xi32> to vector<4x128xi32>
    %66 = arith.cmpi eq, %65, %0 : vector<4x128xi32>
    %67 = arith.extui %66 : vector<4x128xi1> to vector<4x128xi32>
    %68 = arith.sitofp %67 : vector<4x128xi32> to vector<4x128xf32>
    %69 = arith.addf %61, %68 : vector<4x128xf32>
    %c0_23 = arith.constant 0 : index
    %c8 = arith.constant 8 : index
    %70 = vector.load %arg1[%c0_23, %c8] : memref<4x18xi32, #tpu.memory_space<vmem>>, vector<4x1xi32>
    %c72_i32_24 = arith.constant 72 : i32
    %71 = vector.broadcast %c72_i32_24 : i32 to vector<4x1xi32>
    %72 = arith.addi %70, %71 : vector<4x1xi32>
    %73 = vector.broadcast %72 : vector<4x1xi32> to vector<4x128xi32>
    %74 = arith.cmpi eq, %73, %0 : vector<4x128xi32>
    %75 = arith.extui %74 : vector<4x128xi1> to vector<4x128xi32>
    %76 = arith.sitofp %75 : vector<4x128xi32> to vector<4x128xf32>
    %77 = arith.addf %69, %76 : vector<4x128xf32>
    %78 = arith.truncf %77 : vector<4x128xf32> to vector<4x128xbf16>
    %c2_25 = arith.constant 2 : index
    %c0_26 = arith.constant 0 : index
    %c0_27 = arith.constant 0 : index
    %79 = vector.load %arg3[%c2_25, %c0_26, %c0_27] : memref<6x128x128xbf16, #tpu.memory_space<vmem>>, vector<1x128x128xbf16>
    %80 = vector.shape_cast %79 : vector<1x128x128xbf16> to vector<128x128xbf16>
    %cst_28 = arith.constant dense<0.000000e+00> : vector<4x128xf32>
    %81 = tpu.matmul %78, %80, %cst_28 {dimension_numbers = #tpu.dot_dimension_numbers<[1], [0], [0], [1], [0, 0, 1, 1], [], []>} : vector<4x128xbf16>, vector<128x128xbf16>, vector<4x128xf32> -> vector<4x128xf32>
    %82 = arith.addf %56, %81 : vector<4x128xf32>
    %c0_29 = arith.constant 0 : index
    %c9 = arith.constant 9 : index
    %83 = vector.load %arg1[%c0_29, %c9] : memref<4x18xi32, #tpu.memory_space<vmem>>, vector<4x1xi32>
    %84 = vector.broadcast %83 : vector<4x1xi32> to vector<4x128xi32>
    %85 = arith.cmpi eq, %84, %0 : vector<4x128xi32>
    %86 = arith.extui %85 : vector<4x128xi1> to vector<4x128xi32>
    %87 = arith.sitofp %86 : vector<4x128xi32> to vector<4x128xf32>
    %c0_30 = arith.constant 0 : index
    %c10 = arith.constant 10 : index
    %88 = vector.load %arg1[%c0_30, %c10] : memref<4x18xi32, #tpu.memory_space<vmem>>, vector<4x1xi32>
    %c36_i32_31 = arith.constant 36 : i32
    %89 = vector.broadcast %c36_i32_31 : i32 to vector<4x1xi32>
    %90 = arith.addi %88, %89 : vector<4x1xi32>
    %91 = vector.broadcast %90 : vector<4x1xi32> to vector<4x128xi32>
    %92 = arith.cmpi eq, %91, %0 : vector<4x128xi32>
    %93 = arith.extui %92 : vector<4x128xi1> to vector<4x128xi32>
    %94 = arith.sitofp %93 : vector<4x128xi32> to vector<4x128xf32>
    %95 = arith.addf %87, %94 : vector<4x128xf32>
    %c0_32 = arith.constant 0 : index
    %c11 = arith.constant 11 : index
    %96 = vector.load %arg1[%c0_32, %c11] : memref<4x18xi32, #tpu.memory_space<vmem>>, vector<4x1xi32>
    %c72_i32_33 = arith.constant 72 : i32
    %97 = vector.broadcast %c72_i32_33 : i32 to vector<4x1xi32>
    %98 = arith.addi %96, %97 : vector<4x1xi32>
    %99 = vector.broadcast %98 : vector<4x1xi32> to vector<4x128xi32>
    %100 = arith.cmpi eq, %99, %0 : vector<4x128xi32>
    %101 = arith.extui %100 : vector<4x128xi1> to vector<4x128xi32>
    %102 = arith.sitofp %101 : vector<4x128xi32> to vector<4x128xf32>
    %103 = arith.addf %95, %102 : vector<4x128xf32>
    %104 = arith.truncf %103 : vector<4x128xf32> to vector<4x128xbf16>
    %c3_34 = arith.constant 3 : index
    %c0_35 = arith.constant 0 : index
    %c0_36 = arith.constant 0 : index
    %105 = vector.load %arg3[%c3_34, %c0_35, %c0_36] : memref<6x128x128xbf16, #tpu.memory_space<vmem>>, vector<1x128x128xbf16>
    %106 = vector.shape_cast %105 : vector<1x128x128xbf16> to vector<128x128xbf16>
    %cst_37 = arith.constant dense<0.000000e+00> : vector<4x128xf32>
    %107 = tpu.matmul %104, %106, %cst_37 {dimension_numbers = #tpu.dot_dimension_numbers<[1], [0], [0], [1], [0, 0, 1, 1], [], []>} : vector<4x128xbf16>, vector<128x128xbf16>, vector<4x128xf32> -> vector<4x128xf32>
    %108 = arith.addf %82, %107 : vector<4x128xf32>
    %c0_38 = arith.constant 0 : index
    %c12 = arith.constant 12 : index
    %109 = vector.load %arg1[%c0_38, %c12] : memref<4x18xi32, #tpu.memory_space<vmem>>, vector<4x1xi32>
    %110 = vector.broadcast %109 : vector<4x1xi32> to vector<4x128xi32>
    %111 = arith.cmpi eq, %110, %0 : vector<4x128xi32>
    %112 = arith.extui %111 : vector<4x128xi1> to vector<4x128xi32>
    %113 = arith.sitofp %112 : vector<4x128xi32> to vector<4x128xf32>
    %c0_39 = arith.constant 0 : index
    %c13 = arith.constant 13 : index
    %114 = vector.load %arg1[%c0_39, %c13] : memref<4x18xi32, #tpu.memory_space<vmem>>, vector<4x1xi32>
    %c36_i32_40 = arith.constant 36 : i32
    %115 = vector.broadcast %c36_i32_40 : i32 to vector<4x1xi32>
    %116 = arith.addi %114, %115 : vector<4x1xi32>
    %117 = vector.broadcast %116 : vector<4x1xi32> to vector<4x128xi32>
    %118 = arith.cmpi eq, %117, %0 : vector<4x128xi32>
    %119 = arith.extui %118 : vector<4x128xi1> to vector<4x128xi32>
    %120 = arith.sitofp %119 : vector<4x128xi32> to vector<4x128xf32>
    %121 = arith.addf %113, %120 : vector<4x128xf32>
    %c0_41 = arith.constant 0 : index
    %c14 = arith.constant 14 : index
    %122 = vector.load %arg1[%c0_41, %c14] : memref<4x18xi32, #tpu.memory_space<vmem>>, vector<4x1xi32>
    %c72_i32_42 = arith.constant 72 : i32
    %123 = vector.broadcast %c72_i32_42 : i32 to vector<4x1xi32>
    %124 = arith.addi %122, %123 : vector<4x1xi32>
    %125 = vector.broadcast %124 : vector<4x1xi32> to vector<4x128xi32>
    %126 = arith.cmpi eq, %125, %0 : vector<4x128xi32>
    %127 = arith.extui %126 : vector<4x128xi1> to vector<4x128xi32>
    %128 = arith.sitofp %127 : vector<4x128xi32> to vector<4x128xf32>
    %129 = arith.addf %121, %128 : vector<4x128xf32>
    %130 = arith.truncf %129 : vector<4x128xf32> to vector<4x128xbf16>
    %c4_43 = arith.constant 4 : index
    %c0_44 = arith.constant 0 : index
    %c0_45 = arith.constant 0 : index
    %131 = vector.load %arg3[%c4_43, %c0_44, %c0_45] : memref<6x128x128xbf16, #tpu.memory_space<vmem>>, vector<1x128x128xbf16>
    %132 = vector.shape_cast %131 : vector<1x128x128xbf16> to vector<128x128xbf16>
    %cst_46 = arith.constant dense<0.000000e+00> : vector<4x128xf32>
    %133 = tpu.matmul %130, %132, %cst_46 {dimension_numbers = #tpu.dot_dimension_numbers<[1], [0], [0], [1], [0, 0, 1, 1], [], []>} : vector<4x128xbf16>, vector<128x128xbf16>, vector<4x128xf32> -> vector<4x128xf32>
    %134 = arith.addf %108, %133 : vector<4x128xf32>
    %c0_47 = arith.constant 0 : index
    %c15 = arith.constant 15 : index
    %135 = vector.load %arg1[%c0_47, %c15] : memref<4x18xi32, #tpu.memory_space<vmem>>, vector<4x1xi32>
    %136 = vector.broadcast %135 : vector<4x1xi32> to vector<4x128xi32>
    %137 = arith.cmpi eq, %136, %0 : vector<4x128xi32>
    %138 = arith.extui %137 : vector<4x128xi1> to vector<4x128xi32>
    %139 = arith.sitofp %138 : vector<4x128xi32> to vector<4x128xf32>
    %c0_48 = arith.constant 0 : index
    %c16 = arith.constant 16 : index
    %140 = vector.load %arg1[%c0_48, %c16] : memref<4x18xi32, #tpu.memory_space<vmem>>, vector<4x1xi32>
    %c36_i32_49 = arith.constant 36 : i32
    %141 = vector.broadcast %c36_i32_49 : i32 to vector<4x1xi32>
    %142 = arith.addi %140, %141 : vector<4x1xi32>
    %143 = vector.broadcast %142 : vector<4x1xi32> to vector<4x128xi32>
    %144 = arith.cmpi eq, %143, %0 : vector<4x128xi32>
    %145 = arith.extui %144 : vector<4x128xi1> to vector<4x128xi32>
    %146 = arith.sitofp %145 : vector<4x128xi32> to vector<4x128xf32>
    %147 = arith.addf %139, %146 : vector<4x128xf32>
    %c0_50 = arith.constant 0 : index
    %c17 = arith.constant 17 : index
    %148 = vector.load %arg1[%c0_50, %c17] : memref<4x18xi32, #tpu.memory_space<vmem>>, vector<4x1xi32>
    %c72_i32_51 = arith.constant 72 : i32
    %149 = vector.broadcast %c72_i32_51 : i32 to vector<4x1xi32>
    %150 = arith.addi %148, %149 : vector<4x1xi32>
    %151 = vector.broadcast %150 : vector<4x1xi32> to vector<4x128xi32>
    %152 = arith.cmpi eq, %151, %0 : vector<4x128xi32>
    %153 = arith.extui %152 : vector<4x128xi1> to vector<4x128xi32>
    %154 = arith.sitofp %153 : vector<4x128xi32> to vector<4x128xf32>
    %155 = arith.addf %147, %154 : vector<4x128xf32>
    %156 = arith.truncf %155 : vector<4x128xf32> to vector<4x128xbf16>
    %c5_52 = arith.constant 5 : index
    %c0_53 = arith.constant 0 : index
    %c0_54 = arith.constant 0 : index
    %157 = vector.load %arg3[%c5_52, %c0_53, %c0_54] : memref<6x128x128xbf16, #tpu.memory_space<vmem>>, vector<1x128x128xbf16>
    %158 = vector.shape_cast %157 : vector<1x128x128xbf16> to vector<128x128xbf16>
    %cst_55 = arith.constant dense<0.000000e+00> : vector<4x128xf32>
    %159 = tpu.matmul %156, %158, %cst_55 {dimension_numbers = #tpu.dot_dimension_numbers<[1], [0], [0], [1], [0, 0, 1, 1], [], []>} : vector<4x128xbf16>, vector<128x128xbf16>, vector<4x128xf32> -> vector<4x128xf32>
    %160 = arith.addf %134, %159 : vector<4x128xf32>
    %c0_56 = arith.constant 0 : index
    %c0_57 = arith.constant 0 : index
    %161 = vector.load %arg5[%c0_56, %c0_57] : memref<1x128xf32, #tpu.memory_space<vmem>>, vector<1x128xf32>
    %162 = vector.broadcast %161 : vector<1x128xf32> to vector<4x128xf32>
    %163 = arith.addf %160, %162 : vector<4x128xf32>
    %164 = math.tanh %163 : vector<4x128xf32>
    %165 = arith.truncf %164 : vector<4x128xf32> to vector<4x128xbf16>
    %c0_58 = arith.constant 0 : index
    %c0_59 = arith.constant 0 : index
    %166 = vector.load %arg6[%c0_58, %c0_59] : memref<128x128xbf16, #tpu.memory_space<vmem>>, vector<128x128xbf16>
    %cst_60 = arith.constant dense<0.000000e+00> : vector<4x128xf32>
    %167 = tpu.matmul %165, %166, %cst_60 {dimension_numbers = #tpu.dot_dimension_numbers<[1], [0], [0], [1], [0, 0, 1, 1], [], []>} : vector<4x128xbf16>, vector<128x128xbf16>, vector<4x128xf32> -> vector<4x128xf32>
    %c0_61 = arith.constant 0 : index
    %c0_62 = arith.constant 0 : index
    %168 = vector.load %arg7[%c0_61, %c0_62] : memref<1x128xf32, #tpu.memory_space<vmem>>, vector<1x128xf32>
    %169 = vector.broadcast %168 : vector<1x128xf32> to vector<4x128xf32>
    %170 = arith.addf %167, %169 : vector<4x128xf32>
    %171 = math.tanh %170 : vector<4x128xf32>
    %172 = arith.truncf %171 : vector<4x128xf32> to vector<4x128xbf16>
    %c0_63 = arith.constant 0 : index
    %c0_64 = arith.constant 0 : index
    %173 = vector.load %arg8[%c0_63, %c0_64] : memref<128x128xbf16, #tpu.memory_space<vmem>>, vector<128x128xbf16>
    %cst_65 = arith.constant dense<0.000000e+00> : vector<4x128xf32>
    %174 = tpu.matmul %172, %173, %cst_65 {dimension_numbers = #tpu.dot_dimension_numbers<[1], [0], [0], [1], [0, 0, 1, 1], [], []>} : vector<4x128xbf16>, vector<128x128xbf16>, vector<4x128xf32> -> vector<4x128xf32>
    %c0_66 = arith.constant 0 : index
    %c0_67 = arith.constant 0 : index
    %175 = vector.load %arg9[%c0_66, %c0_67] : memref<1x128xf32, #tpu.memory_space<vmem>>, vector<1x128xf32>
    %176 = vector.broadcast %175 : vector<1x128xf32> to vector<4x128xf32>
    %177 = arith.addf %174, %176 : vector<4x128xf32>
    %c0_68 = arith.constant 0 : index
    %c0_69 = arith.constant 0 : index
    %178 = vector.load %arg10[%c0_68, %c0_69] : memref<4x128xf32, #tpu.memory_space<vmem>>, vector<4x128xf32>
    tpu.vector_store %arg10[%c0_68, %c0_69], %177 {strides = array<i32>} : memref<4x128xf32, #tpu.memory_space<vmem>>, vector<4x128xf32>,
    return
  }
  func.func @transform_0(%arg0: i32) -> (i32, i32) {
    %c0_i32 = arith.constant 0 : i32
    %c0_i32_0 = arith.constant 0 : i32
    return %arg0, %c0_i32 : i32, i32
  }
  func.func @transform_1(%arg0: i32) -> (i32, i32) {
    %c0_i32 = arith.constant 0 : i32
    %c0_i32_0 = arith.constant 0 : i32
    return %arg0, %c0_i32 : i32, i32
  }
  func.func @transform_2(%arg0: i32) -> (i32, i32, i32) {
    %c0_i32 = arith.constant 0 : i32
    %c0_i32_0 = arith.constant 0 : i32
    %c0_i32_1 = arith.constant 0 : i32
    %c0_i32_2 = arith.constant 0 : i32
    return %c0_i32, %c0_i32_0, %c0_i32_1 : i32, i32, i32
  }
  func.func @transform_3(%arg0: i32) -> (i32, i32) {
    %c0_i32 = arith.constant 0 : i32
    %c0_i32_0 = arith.constant 0 : i32
    %c0_i32_1 = arith.constant 0 : i32
    return %c0_i32, %c0_i32_0 : i32, i32
  }
  func.func @transform_4(%arg0: i32) -> (i32, i32) {
    %c0_i32 = arith.constant 0 : i32
    %c0_i32_0 = arith.constant 0 : i32
    %c0_i32_1 = arith.constant 0 : i32
    return %c0_i32, %c0_i32_0 : i32, i32
  }
  func.func @transform_5(%arg0: i32) -> (i32, i32) {
    %c0_i32 = arith.constant 0 : i32
    %c0_i32_0 = arith.constant 0 : i32
    %c0_i32_1 = arith.constant 0 : i32
    return %c0_i32, %c0_i32_0 : i32, i32
  }
  func.func @transform_6(%arg0: i32) -> (i32, i32) {
    %c0_i32 = arith.constant 0 : i32
    %c0_i32_0 = arith.constant 0 : i32
    %c0_i32_1 = arith.constant 0 : i32
    return %c0_i32, %c0_i32_0 : i32, i32
  }
  func.func @transform_7(%arg0: i32) -> (i32, i32) {
    %c0_i32 = arith.constant 0 : i32
    %c0_i32_0 = arith.constant 0 : i32
    %c0_i32_1 = arith.constant 0 : i32
    return %c0_i32, %c0_i32_0 : i32, i32
  }
  func.func @transform_8(%arg0: i32) -> (i32, i32) {
    %c0_i32 = arith.constant 0 : i32
    %c0_i32_0 = arith.constant 0 : i32
    %c0_i32_1 = arith.constant 0 : i32
    return %c0_i32, %c0_i32_0 : i32, i32
  }
  func.func @transform_9(%arg0: i32) -> (i32, i32) {
    %c0_i32 = arith.constant 0 : i32
    %c0_i32_0 = arith.constant 0 : i32
    return %arg0, %c0_i32 : i32, i32
  }
}

</mosaic_0001>

<bundles_post_ra>
// kernel: discriminator_forward.1
= control target key start
LH: loop header
LB: loop body
LE: loop exit
PB: predicated region body
PF: predicated region fallthrough
CT: control target
= control target key end

     0   :  { %14 = vsyncpa [#allocation3], 0  ;;  %s2050_s0 = inlined_call_operand.vmem [shape: s32[4,18], index: 0, kind: input, shape index: {}]   ;;  %s2051_s1 = inlined_call_operand.vmem [shape: f32[4,18], index: 1, kind: input, shape index: {}]   ;;  %s2052_s2 = inlined_call_operand.hbm [shape: bf16[6,128,128], index: 2, kind: input, shape index: {}]   ;;  %s2053_s3 = inlined_call_operand.hbm [shape: bf16[18,128], index: 3, kind: input, shape index: {}]   ;;  %s2054_s4 = inlined_call_operand.hbm [shape: f32[1,128], index: 4, kind: input, shape index: {}]   ;;  %s2055_s5 = inlined_call_operand.hbm [shape: bf16[128,128], index: 5, kind: input, shape index: {}]   ;;  %s2056_s6 = inlined_call_operand.vmem [shape: f32[1,128], index: 6, kind: input, shape index: {}]   ;;  %s2057_s7 = inlined_call_operand.hbm [shape: bf16[128,128], index: 7, kind: input, shape index: {}]   ;;  %s2058_s8 = inlined_call_operand.vmem [shape: f32[1,128], index: 8, kind: input, shape index: {}]   ;;  %s2059_s9 = inlined_call_operand.vmem [shape: f32[4,128], index: 9, kind: output, shape index: {}]  }
   0x1   :  { %15 = vsyncpa [#allocation5], 0 }
   0x2   :  { %16 = vsyncpa [#allocation8], 0  ;;  %s1730_s30 = smov [#allocation4]   ;;  %s1731_s11 = smov [#allocation7]  }
   0x3   :  { %s38_s10 = sshll.u32 %s1730_s30, 4  ;;  %s60_s12 = sshll.u32 %s1731_s11, 4  ;;  %s39_s10 = int_to_ptr.vmem [resolvable:$true] %s38_s10  ;;  %s1807_s12 = int_to_ptr.vmem [resolvable:$true] %s60_s12 }
   0x4   :  { %s1614_s15 = scalar_lea.hbm %s2053_s3, 192 }
   0x5   :  { %p1615_p0 = scmp.ne.s32.totalorder %s2053_s3, %s1614_s15  ;;  %p1618_p1 = scmp.lt.u32.totalorder %s1614_s15, %s2053_s3 }
   0x7   :  { %p1620_p2 = pnand %p1618_p1, %p1615_p0 }
   0x9   :  { %1623 = shalt.err (!%p1620_p2)
}
   0xa   :  { %s1624_s20 = scalar_lea.vmem %s39_s10, 192  ;;  %p1629_p4 = scmp.lt.s32.totalorder %s39_s10, %s39_s10 }
   0xb   :  { %p1625_p3 = scmp.ne.s32.totalorder %s39_s10, %s1624_s20  ;;  %p1630_p5 = scmp.lt.s32.totalorder %s1624_s20, %s1624_s20 }
   0xd   :  { %p1631_p6 = por %p1630_p5, %p1629_p4 }
   0xf   :  { %p1632_p7 = pnand %p1631_p6, %p1625_p3 }
  0x11   :  { %1635 = shalt.err (!%p1632_p7)
}
  0x12   :  { %s1732_s21 = smov 64   ;;  %s1733_s22 = smov 4  }
  0x13   :  { %44 = dma.hbm_to_vmem [thread:$0]  %s2053_s3, 192, %s39_s10, [#allocation5], %s1732_s21, %s1732_s21, %s1733_s22  }
  0x14   :  { %s1636_s27 = scalar_lea.hbm %s2055_s5, 1024 }
  0x15   :  { %p1637_p8 = scmp.ne.s32.totalorder %s2055_s5, %s1636_s27  ;;  %p1640_p9 = scmp.lt.u32.totalorder %s1636_s27, %s2055_s5 }
  0x17   :  { %p1642_p10 = pnand %p1640_p9, %p1637_p8 }
  0x19   :  { %1645 = shalt.err (!%p1642_p10)
}
  0x1a   :  { %s1646_s13 = scalar_lea.vmem %s1807_s12, 1024  ;;  %p1651_p12 = scmp.lt.s32.totalorder %s1807_s12, %s1807_s12 }
  0x1b   :  { %p1647_p11 = scmp.ne.s32.totalorder %s1807_s12, %s1646_s13  ;;  %p1652_p13 = scmp.lt.s32.totalorder %s1646_s13, %s1646_s13 }
  0x1d   :  { %p1653_p0 = por %p1652_p13, %p1651_p12 }
  0x1f   :  { %p1654_p1 = pnand %p1653_p0, %p1647_p11 }
  0x21   :  { %1657 = shalt.err (!%p1654_p1)
}
  0x22   :  { %66 = dma.hbm_to_vmem [thread:$0]  %s2055_s5, 1024, %s1807_s12, [#allocation8], %s1732_s21, %s1732_s21, %s1733_s22  }
  0x23   :  { %s1734_s14 = smov [#allocation2]   ;;  %s1735_s16 = smov [#allocation6]  }
  0x24   :  { %s26_s15 = sshll.u32 %s1734_s14, 4  ;;  %s51_s17 = sshll.u32 %s1735_s16, 4  ;;  %s27_s15 = int_to_ptr.vmem [resolvable:$true] %s26_s15  ;;  %s52_s17 = int_to_ptr.vmem [resolvable:$true] %s51_s17 }
  0x25   :  { %s1658_s20 = scalar_lea.hbm %s2052_s2, 6144 }
  0x26   :  { %p1659_p2 = scmp.ne.s32.totalorder %s2052_s2, %s1658_s20  ;;  %p1662_p3 = scmp.lt.u32.totalorder %s1658_s20, %s2052_s2 }
  0x28   :  { %p1664_p4 = pnand %p1662_p3, %p1659_p2 }
  0x2a   :  { %1667 = shalt.err (!%p1664_p4)
}
  0x2b   :  { %s1668_s5 = scalar_lea.vmem %s27_s15, 6144  ;;  %p1673_p6 = scmp.lt.s32.totalorder %s27_s15, %s27_s15 }
  0x2c   :  { %p1669_p5 = scmp.ne.s32.totalorder %s27_s15, %s1668_s5  ;;  %p1674_p7 = scmp.lt.s32.totalorder %s1668_s5, %s1668_s5 }
  0x2e   :  { %p1675_p8 = por %p1674_p7, %p1673_p6 }
  0x30   :  { %p1676_p9 = pnand %p1675_p8, %p1669_p5 }
  0x32   :  { %1679 = shalt.err (!%p1676_p9)
}
  0x33   :  { %32 = dma.hbm_to_vmem [thread:$0]  %s2052_s2, 6144, %s27_s15, [#allocation3], %s1732_s21, %s1732_s21, %s1733_s22  }
  0x34   :  { %s1680_s30 = scalar_lea.hbm %s2054_s4, 16 }
  0x35   :  { %p1681_p10 = scmp.ne.s32.totalorder %s2054_s4, %s1680_s30  ;;  %p1684_p11 = scmp.lt.u32.totalorder %s1680_s30, %s2054_s4 }
  0x37   :  { %p1686_p12 = pnand %p1684_p11, %p1681_p10 }
  0x39   :  { %1689 = shalt.err (!%p1686_p12)
}
  0x3a   :  { %s1690_s14 = scalar_lea.vmem %s52_s17, 16  ;;  %s1694_s16 = scalar_lea.vmem %s52_s17, 32 }
  0x3b   :  { %p1691_p13 = scmp.ne.s32.totalorder %s52_s17, %s1690_s14  ;;  %p1695_p0 = scmp.lt.s32.totalorder %s52_s17, %s52_s17 }
  0x3c   :  { %p1696_p1 = scmp.lt.s32.totalorder %s1694_s16, %s1690_s14 }
  0x3e   :  { %p1697_p2 = por %p1696_p1, %p1695_p0 }
  0x40   :  { %p1698_p3 = pnand %p1697_p2, %p1691_p13 }
  0x42   :  { %1701 = shalt.err (!%p1698_p3)
}
  0x43   :  { %54 = dma.hbm_to_vmem [thread:$0]  %s2054_s4, 16, %s52_s17, [#allocation5]  }
  0x44   :  { %s1736_s18 = smov [#allocation9]   ;;  %s1702_s24 = scalar_lea.hbm %s2057_s7, 1024 }
  0x45   :  { %s74_s19 = sshll.u32 %s1736_s18, 4  ;;  %p1703_p4 = scmp.ne.s32.totalorder %s2057_s7, %s1702_s24  ;;  %s75_s19 = int_to_ptr.vmem [resolvable:$true] %s74_s19 }
  0x46   :  { %p1706_p5 = scmp.lt.u32.totalorder %s1702_s24, %s2057_s7 }
  0x48   :  { %p1708_p6 = pnand %p1706_p5, %p1703_p4 }
  0x4a   :  { %1711 = shalt.err (!%p1708_p6)
}
  0x4b   :  { %s1712_s27 = scalar_lea.vmem %s75_s19, 1024  ;;  %p1717_p8 = scmp.lt.s32.totalorder %s75_s19, %s75_s19 }
  0x4c   :  { %p1713_p7 = scmp.ne.s32.totalorder %s75_s19, %s1712_s27  ;;  %p1718_p9 = scmp.lt.s32.totalorder %s1712_s27, %s1712_s27 }
  0x4e   :  { %p1719_p10 = por %p1718_p9, %p1717_p8 }
  0x50   :  { %p1720_p11 = pnand %p1719_p10, %p1713_p7 }
  0x52   :  { %1723 = shalt.err (!%p1720_p11)
}
  0x53   :  { %80 = dma.hbm_to_vmem [thread:$0]  %s2057_s7, 1024, %s75_s19, [#allocation8], %s1732_s21, %s1732_s21, %s1733_s22  }
  0x54   :  { %1724 = dma.done.wait [#allocation3], 6144  }
  0x55   :  { %1725 = vsyncadd [#allocation3], 4294961152 }
  0x56   :  { %1726 = dma.done.wait [#allocation5], 208  }
  0x57   :  { %1727 = vsyncadd [#allocation5], 4294967088 }
  0x58   :  { %1728 = dma.done.wait [#allocation8], 2048  }
  0x59   :  { %1729 = vsyncadd [#allocation8], 4294965248  ;;  %v1737_v0 = vmov 3   ;;  %v1738_v1 = vmov 0   ;;  %v1739_v2 = vmov 0.0   ;;  %vm247_vm0 = vcmask 1040384  }
  0x5a   :  { %1527 = vset.pattern.permute.xlu1 %v1737_v0  ;;  %1526 = vset.pattern.permute.xlu0 %v1738_v1  ;;  %vm1740_vm1 = vmmov 0   ;;  %v1895_v3 = vld [vmem:[%s2050_s0] sm:$0xf]  ;;  %v1544_v6 = vld [vmem:[#allocation4] sm:$0xff]   ;;  %v1741_v12 = vmov 2   ;;  %v1742_v13 = vmov 1   ;;  %v99_v43 = vlaneseq }
  0x5b   :  { %1351 = vmatprep.subr.bf16.mxu1 %v1739_v2  ;;  %1331 = vmatprep.subr.bf16.mxu0 %v1739_v2  ;;  %v1900_v4 = vadd.s32 72, %v1895_v3  ;;  %v1903_v5 = vadd.s32 36, %v1895_v3  ;;  %v1546_v7 = vld [vmem:[#allocation2] sm:$0xff]   ;;  %v1545_v8 = vld [vmem:[#allocation4 + $0x8] ss:$0 sps:$4 sm:$0x11]  }
  0x5c   :  { %1355 = vmatprep.mubr.msk.bf16.mxu1 %vm1740_vm1, %v1739_v2  ;;  %1347 = vmatprep.mubr.msk.bf16.mxu0 %vm1740_vm1, %v1739_v2  ;;  %v1547_v9 = vld [vmem:[#allocation2 + $0x8] sm:$0xff]   ;;  %v249_v11 = vsel %vm247_vm0, %v1545_v8, 0  ;;  %v1549_v15 = vld [vmem:[#allocation2 + $0x10] sm:$0xff]   ;;  %vm243_vm2 = vcmask 146432   ;;  %v1548_v16 = vld [vmem:[#allocation2 + $0x40] sm:$0xff]   ;;  %v1743_v17 = vmov 4  }
  0x5d   :  { %292 = vperm.xlu1 %1527, %v1895_v3   ;;  %108 = vperm.xlu0 %1526, %v1895_v3   ;;  %v101_v10 = vld [vmem:[%s2051_s1] sm:$0xf]  ;;  %v1744_v18 = vmov 5   ;;  %v1551_v20 = vld [vmem:[#allocation2 + $0x18] sm:$0xff]   ;;  %v1745_v21 = vmov 6   ;;  %v1746_v22 = vmov 8  }
  0x5e   :  { %1352 = vmatpush3.bf16.msra.mxu1 %v1544_v6  ;;  %1332 = vmatpush3.bf16.msra.mxu0 %v1546_v7  ;;  %v102_v14 = vpack.c.bf16 %v101_v10, %v101_v10  ;;  %v1550_v19 = vld [vmem:[#allocation2 + $0x48] sm:$0xff]   ;;  %v1552_v23 = vld [vmem:[#allocation2 + $0x50] sm:$0xff]   ;;  %v1553_v24 = vld [vmem:[#allocation2 + $0x20] sm:$0xff]   ;;  %v1747_v25 = vmov 7   ;;  %v1748_v26 = vmov 11   ;;  %v1749_v29 = vmov 9  }
  0x5f   :  { %1353 = vmatprep.subr.bf16.mxu1 %v1739_v2  ;;  %1333 = vmatprep.subr.bf16.mxu0 %v1739_v2  ;;  %v1554_v27 = vld [vmem:[#allocation2 + $0x58] sm:$0xff]   ;;  %v1555_v28 = vld [vmem:[#allocation2 + $0x28] sm:$0xff]   ;;  %v1750_v30 = vmov 14   ;;  %v1556_v31 = vld [vmem:[#allocation2 + $0x60] sm:$0xff]   ;;  %v1751_v33 = vmov 10   ;;  %v1752_v34 = vmov 17  }
  0x60   :  { %v1557_v32 = vld [vmem:[#allocation2 + $0x30] sm:$0xff]   ;;  %v1558_v35 = vld [vmem:[#allocation2 + $0x68] sm:$0xff]   ;;  %v1559_v36 = vld [vmem:[#allocation2 + $0x38] sm:$0xff]   ;;  %v1753_v37 = vmov 12   ;;  %v1754_v39 = vmov 13   ;;  %v1755_v41 = vmov 15  }
  0x61   :  { %1529 = vset.pattern.permute.xlu1 %v1741_v12  ;;  %1528 = vset.pattern.permute.xlu0 %v1742_v13  ;;  %v1560_v38 = vld [vmem:[#allocation2 + $0x70] sm:$0xff]   ;;  %v1562_v40 = vld [vmem:[#allocation2 + $0x78] sm:$0xff]   ;;  %v1756_v42 = vmov 16   ;;  %v1945_v46 = vand.u32 127, %v99_v43  ;;  %v1561_v56 = vld [vmem:[#allocation2 + $0x80] sm:$0xff]  }
  0x62   :  { %123 = vperm.xlu1 %1529, %v1900_v4   ;;  %115 = vperm.xlu0 %1528, %v1903_v5   ;;  %v1563_v63 = vld [vmem:[#allocation2 + $0x88] sm:$0xff]   ;;  %v1564_v0 = vld [vmem:[#allocation2 + $0xc0] sm:$0xff]   ;;  %v1567_v7 = vld [vmem:[#allocation2 + $0x98] sm:$0xff]  }
  0x63   :  { %1354 = vmatpush3.bf16.msra.mxu1 %v249_v11  ;;  %1334 = vmatpush3.bf16.msra.mxu0 %v1547_v9  ;;  %v1568_v8 = vld [vmem:[#allocation2 + $0xd0] sm:$0xff]   ;;  %v1569_v10 = vld [vmem:[#allocation2 + $0xa0] sm:$0xff]   ;;  %v1570_v11 = vld [vmem:[#allocation2 + $0xd8] sm:$0xff]  }
  0x64   :  { %1359 = vmatprep.subr.bf16.mxu1 %v1739_v2  ;;  %1335 = vmatprep.subr.bf16.mxu0 %v1739_v2  ;;  %v1571_v13 = vld [vmem:[#allocation2 + $0xa8] sm:$0xff]  }
  0x66   :  { %1530 = vset.pattern.permute.xlu1 %v1743_v17  ;;  %1531 = vset.pattern.permute.xlu0 %v1744_v18  ;;  %v1573_v18 = vld [vmem:[#allocation2 + $0xb0] sm:$0xff]  }
  0x67   :  { %298 = vperm.xlu1 %1530, %v1903_v5   ;;  %305 = vperm.xlu0 %1531, %v1900_v4  }
  0x68   :  { %1356 = vmatmul.mubr.msk.bf16.vlgmr.msra.gmra.mrb[0].mxu1 %vm243_vm2, %v102_v14  ;;  %1336 = vmatpush3.bf16.msra.mxu0 %v1549_v15  ;;  %v1572_v14 = vld [vmem:[#allocation2 + $0xe0] sm:$0xff]  }
  0x69   :  { %1360 = vmatpush3.bf16.msra.mxu1 %v1548_v16  ;;  %1337 = vmatprep.subr.bf16.mxu0 %v1739_v2 }
  0x6a   :  { %1361 = vmatprep.subr.bf16.mxu1 %v1739_v2  ;;  %1375 = vmatprep.mubr.msk.bf16.mxu1 %vm1740_vm1, %v1739_v2 }
  0x6b   :  { %1532 = vset.pattern.permute.xlu1 %v1745_v21  ;;  %1534 = vset.pattern.permute.xlu0 %v1746_v22  ;;  %v1574_v21 = vld [vmem:[#allocation2 + $0xe8] sm:$0xff]  }
  0x6c   :  { %419 = vperm.xlu1 %1532, %v1895_v3   ;;  %432 = vperm.xlu0 %1534, %v1900_v4  }
  0x6d   :  { %1362 = vmatpush3.bf16.msra.mxu1 %v1550_v19  ;;  %1338 = vmatpush3.bf16.msra.mxu0 %v1551_v20 }
  0x6e   :  { %1363 = vmatprep.subr.bf16.mxu1 %v1739_v2  ;;  %1339 = vmatprep.subr.bf16.mxu0 %v1739_v2 }
  0x70   :  { %1533 = vset.pattern.permute.xlu1 %v1747_v25  ;;  %1537 = vset.pattern.permute.xlu0 %v1748_v26  ;;  %v1575_v25 = vld [vmem:[#allocation2 + $0xb8] sm:$0xff]  }
  0x71   :  { %425 = vperm.xlu1 %1533, %v1903_v5   ;;  %559 = vperm.xlu0 %1537, %v1900_v4  }
  0x72   :  { %1364 = vmatpush3.bf16.msra.mxu1 %v1552_v23  ;;  %1340 = vmatpush3.bf16.msra.mxu0 %v1553_v24 }
  0x73   :  { %1365 = vmatprep.subr.bf16.mxu1 %v1739_v2  ;;  %1341 = vmatprep.subr.bf16.mxu0 %v1739_v2 }
  0x75   :  { %1535 = vset.pattern.permute.xlu1 %v1749_v29  ;;  %1540 = vset.pattern.permute.xlu0 %v1750_v30  ;;  %v1577_v30 = vld [vmem:[#allocation2 + $0x100] sm:$0xff]  }
  0x76   :  { %546 = vperm.xlu1 %1535, %v1895_v3   ;;  %686 = vperm.xlu0 %1540, %v1900_v4  }
  0x77   :  { %1366 = vmatpush3.bf16.msra.mxu1 %v1554_v27  ;;  %1342 = vmatpush3.bf16.msra.mxu0 %v1555_v28  ;;  %v1576_v27 = vld [vmem:[#allocation2 + $0xf0] sm:$0xff]  }
  0x78   :  { %1367 = vmatprep.subr.bf16.mxu1 %v1739_v2  ;;  %1343 = vmatprep.subr.bf16.mxu0 %v1739_v2 }
  0x7a   :  { %1536 = vset.pattern.permute.xlu1 %v1751_v33  ;;  %1543 = vset.pattern.permute.xlu0 %v1752_v34  ;;  %v1579_v34 = vld [vmem:[#allocation2 + $0x108] sm:$0xff]  }
  0x7b   :  { %552 = vperm.xlu1 %1536, %v1903_v5   ;;  %813 = vperm.xlu0 %1543, %v1900_v4   ;;  %v1565_v4 = vld [vmem:[#allocation2 + $0x90] sm:$0xff]  }
  0x7c   :  { %1368 = vmatpush3.bf16.msra.mxu1 %v1556_v31  ;;  %1344 = vmatpush3.bf16.msra.mxu0 %v1557_v32  ;;  %v1578_v32 = vld [vmem:[#allocation2 + $0xf8] sm:$0xff]  }
  0x7d   :  { %1369 = vmatprep.subr.bf16.mxu1 %v1739_v2  ;;  %1345 = vmatprep.subr.bf16.mxu0 %v1739_v2 }
  0x7f   :  { %1538 = vset.pattern.permute.xlu1 %v1753_v37 }
  0x80   :  { %673 = vperm.xlu1 %1538, %v1895_v3   ;;  %1370 = vmatpush3.bf16.msra.mxu1 %v1558_v35  ;;  %v1580_v35 = vld [vmem:[#allocation2 + $0x140] sm:$0xff]  }
  0x81   :  { %1346 = vmatpush3.bf16.msra.mxu0 %v1559_v36  ;;  %1371 = vmatprep.subr.bf16.mxu1 %v1739_v2 }
  0x82   :  { %1379 = vmatprep.subr.bf16.mxu0 %v1739_v2 }
  0x84   :  { %1539 = vset.pattern.permute.xlu1 %v1754_v39  ;;  %1372 = vmatpush3.bf16.msra.mxu1 %v1560_v38  ;;  %v1581_v38 = vld [vmem:[#allocation2 + $0x110] sm:$0xff]   ;;  %v1582_v39 = vld [vmem:[#allocation2 + $0x148] sm:$0xff]  }
  0x85   :  { %679 = vperm.xlu1 %1539, %v1903_v5   ;;  %1373 = vmatprep.subr.bf16.mxu1 %v1739_v2 }
  0x88   :  { %1374 = vmatpush3.bf16.msra.mxu1 %v1562_v40 }
  0x89   :  { %1541 = vset.pattern.permute.xlu1 %v1755_v41  ;;  %1399 = vmatprep.subr.bf16.mxu1 %v1739_v2  ;;  %v1583_v41 = vld [vmem:[#allocation2 + $0x118] sm:$0xff]  }
  0x8a   :  { %800 = vperm.xlu1 %1541, %v1895_v3  }
  0x8e   :  { %1542 = vset.pattern.permute.xlu1 %v1756_v42  ;;  %v1584_v42 = vld [vmem:[#allocation2 + $0x150] sm:$0xff]  }
  0x8f   :  { %806 = vperm.xlu1 %1542, %v1903_v5   ;;  %v1566_v5 = vld [vmem:[#allocation2 + $0xc8] sm:$0xff]  }
  0xdc   :  { %v293_v44 = vpop.permute.xlu1 %292  ;;  %v109_v45 = vpop.permute.xlu0 %108 }
  0xdd   :  { %vm110_vm3 = vcmp.eq.s32.totalorder %v109_v45, %v1945_v46  ;;  %vm294_vm6 = vcmp.eq.s32.totalorder %v293_v44, %v1945_v46  ;;  %v1585_v44 = vld [vmem:[#allocation2 + $0x120] sm:$0xff]   ;;  %v1586_v45 = vld [vmem:[#allocation2 + $0x158] sm:$0xff]  }
  0xde   :  { %v1168_v49 = vsel %vm110_vm3, 1.0, %v1739_v2  ;;  %v1182_v57 = vsel %vm294_vm6, 1.0, %v1739_v2 }
  0xe1   :  { %v124_v47 = vpop.permute.xlu1 %123  ;;  %v116_v48 = vpop.permute.xlu0 %115 }
  0xe2   :  { %vm125_vm4 = vcmp.eq.s32.totalorder %v124_v47, %v1945_v46  ;;  %vm117_vm5 = vcmp.eq.s32.totalorder %v116_v48, %v1945_v46  ;;  %v1587_v48 = vld [vmem:[#allocation2 + $0x128] sm:$0xff]  }
  0xe3   :  { %v1169_v50 = vsel %vm117_vm5, 1.0, %v1739_v2  ;;  %v1170_v52 = vsel %vm125_vm4, 1.0, %v1739_v2 }
  0xe4   :  { %v120_v51 = vadd.f32 %v1169_v50, %v1168_v49  ;;  %v1588_v49 = vld [vmem:[#allocation2 + $0x160] sm:$0xff]  }
  0xe6   :  { %v299_v53 = vpop.permute.xlu1 %298  ;;  %v306_v54 = vpop.permute.xlu0 %305  ;;  %v128_v55 = vadd.f32 %v1170_v52, %v120_v51 }
  0xe7   :  { %vm300_vm7 = vcmp.eq.s32.totalorder %v299_v53, %v1945_v46  ;;  %vm307_vm8 = vcmp.eq.s32.totalorder %v306_v54, %v1945_v46  ;;  %v1589_v53 = vld [vmem:[#allocation2 + $0x130] sm:$0xff]  }
  0xe8   :  { %v1183_v58 = vsel %vm300_vm7, 1.0, %v1739_v2  ;;  %v1184_v59 = vsel %vm307_vm8, 1.0, %v1739_v2  ;;  %v129_v60 = vpack.c.bf16 %v128_v55, %v128_v55 }
  0xe9   :  { %v303_v61 = vadd.f32 %v1183_v58, %v1182_v57 }
  0xea   :  { %1348 = vmatmul.mubr.bf16.vlgmr.msra.gmra.mrb[0].mxu0 %v129_v60  ;;  %v1591_v60 = vld [vmem:[#allocation2 + $0x138] sm:$0xff]  }
  0xeb   :  { %v310_v62 = vadd.f32 %v1184_v59, %v303_v61  ;;  %1380 = vmatpush3.bf16.msra.mxu0 %v1561_v56  ;;  %1395 = vmatprep.mubr.msk.bf16.mxu0 %vm1740_vm1, %v1739_v2  ;;  %v420_v1 = vpop.permute.xlu1 %419  ;;  %v433_v12 = vpop.permute.xlu0 %432  ;;  %v1590_v56 = vld [vmem:[#allocation2 + $0x168] sm:$0xff]  }
  0xec   :  { %1381 = vmatprep.subr.bf16.mxu0 %v1739_v2  ;;  %vm421_vm9 = vcmp.eq.s32.totalorder %v420_v1, %v1945_v46  ;;  %vm434_vm11 = vcmp.eq.s32.totalorder %v433_v12, %v1945_v46  ;;  %v1597_v12 = vld [vmem:[#allocation7 + $0x18] sm:$0xff]  }
  0xed   :  { %v311_v3 = vpack.c.bf16 %v310_v62, %v310_v62  ;;  %v1193_v16 = vsel %vm421_vm9, 1.0, %v1739_v2  ;;  %v1195_v22 = vsel %vm434_vm11, 1.0, %v1739_v2  ;;  %v1592_v62 = vld [vmem:[#allocation2 + $0x170] sm:$0xff]  }
  0xef   :  { %1382 = vmatpush3.bf16.msra.mxu0 %v1563_v63  ;;  %1376 = vmatmul.mubr.bf16.vlgmr.msra.gmra.mrb[4].mxu1 %v311_v3  ;;  %v1593_v3 = vld [vmem:[#allocation2 + $0x178] sm:$0xff]  }
  0xf0   :  { %1400 = vmatpush3.bf16.msra.mxu1 %v1564_v0  ;;  %1383 = vmatprep.subr.bf16.mxu0 %v1739_v2  ;;  %v426_v6 = vpop.permute.xlu1 %425  ;;  %v560_v20 = vpop.permute.xlu0 %559 }
  0xf1   :  { %1401 = vmatprep.subr.bf16.mxu1 %v1739_v2  ;;  %1415 = vmatprep.mubr.msk.bf16.mxu1 %vm1740_vm1, %v1739_v2  ;;  %vm427_vm10 = vcmp.eq.s32.totalorder %v426_v6, %v1945_v46  ;;  %vm561_vm14 = vcmp.eq.s32.totalorder %v560_v20, %v1945_v46  ;;  %v1605_v20 = vld [vmem:[#allocation9 + $0x18] sm:$0xff]  }
  0xf2   :  { %v1194_v17 = vsel %vm427_vm10, 1.0, %v1739_v2  ;;  %v1206_v29 = vsel %vm561_vm14, 1.0, %v1739_v2 }
  0xf3   :  { %1384 = vmatpush3.bf16.msra.mxu0 %v1565_v4  ;;  %v430_v19 = vadd.f32 %v1194_v17, %v1193_v16  ;;  %v1601_v16 = vld [vmem:[#allocation7 + $0x38] sm:$0xff]   ;;  %v1602_v17 = vld [vmem:[#allocation9] sm:$0xff]  }
  0xf4   :  { %1402 = vmatpush3.bf16.msra.mxu1 %v1566_v5  ;;  %1385 = vmatprep.subr.bf16.mxu0 %v1739_v2 }
  0xf5   :  { %1403 = vmatprep.subr.bf16.mxu1 %v1739_v2  ;;  %v547_v9 = vpop.permute.xlu1 %546  ;;  %v437_v26 = vadd.f32 %v1195_v22, %v430_v19  ;;  %v687_v47 = vpop.permute.xlu0 %686  ;;  %v1604_v19 = vld [vmem:[#allocation9 + $0x10] sm:$0xff]  }
  0xf6   :  { %vm548_vm12 = vcmp.eq.s32.totalorder %v547_v9, %v1945_v46  ;;  %vm688_vm2 = vcmp.eq.s32.totalorder %v687_v47, %v1945_v46  ;;  %v1594_v9 = vld [vmem:[#allocation7] sm:$0xff]  }
  0xf7   :  { %1386 = vmatpush3.bf16.msra.mxu0 %v1567_v7  ;;  %v1204_v23 = vsel %vm548_vm12, 1.0, %v1739_v2  ;;  %v438_v31 = vpack.c.bf16 %v437_v26, %v437_v26  ;;  %v1217_v57 = vsel %vm688_vm2, 1.0, %v1739_v2 }
  0xf8   :  { %1404 = vmatpush3.bf16.msra.mxu1 %v1568_v8  ;;  %1387 = vmatprep.subr.bf16.mxu0 %v1739_v2 }
  0xf9   :  { %1405 = vmatprep.subr.bf16.mxu1 %v1739_v2 }
  0xfa   :  { %v553_v15 = vpop.permute.xlu1 %552  ;;  %v814_v55 = vpop.permute.xlu0 %813 }
  0xfb   :  { %1388 = vmatpush3.bf16.msra.mxu0 %v1569_v10  ;;  %vm554_vm13 = vcmp.eq.s32.totalorder %v553_v15, %v1945_v46  ;;  %vm815_vm5 = vcmp.eq.s32.totalorder %v814_v55, %v1945_v46  ;;  %v1595_v10 = vld [vmem:[#allocation7 + $0x8] sm:$0xff]   ;;  %v1600_v15 = vld [vmem:[#allocation7 + $0x30] sm:$0xff]  }
  0xfc   :  { %1406 = vmatpush3.bf16.msra.mxu1 %v1570_v11  ;;  %1389 = vmatprep.subr.bf16.mxu0 %v1739_v2  ;;  %v1205_v24 = vsel %vm554_vm13, 1.0, %v1739_v2  ;;  %v1228_v0 = vsel %vm815_vm5, 1.0, %v1739_v2  ;;  %v1596_v11 = vld [vmem:[#allocation7 + $0x10] sm:$0xff]  }
  0xfd   :  { %1407 = vmatprep.subr.bf16.mxu1 %v1739_v2  ;;  %v557_v28 = vadd.f32 %v1205_v24, %v1204_v23 }
  0xff   :  { %1390 = vmatpush3.bf16.msra.mxu0 %v1571_v13  ;;  %v564_v33 = vadd.f32 %v1206_v29, %v557_v28  ;;  %v674_v36 = vpop.permute.xlu1 %673  ;;  %v1598_v13 = vld [vmem:[#allocation7 + $0x20] sm:$0xff]  }
 0x100   :  { %1408 = vmatpush3.bf16.msra.mxu1 %v1572_v14  ;;  %1391 = vmatprep.subr.bf16.mxu0 %v1739_v2  ;;  %vm675_vm15 = vcmp.eq.s32.totalorder %v674_v36, %v1945_v46  ;;  %v1599_v14 = vld [vmem:[#allocation7 + $0x28] sm:$0xff]  }
 0x101   :  { %1409 = vmatprep.subr.bf16.mxu1 %v1739_v2  ;;  %v565_v37 = vpack.c.bf16 %v564_v33, %v564_v33  ;;  %v1215_v51 = vsel %vm675_vm15, 1.0, %v1739_v2 }
 0x103   :  { %1392 = vmatpush3.bf16.msra.mxu0 %v1573_v18  ;;  %v1603_v18 = vld [vmem:[#allocation9 + $0x8] sm:$0xff]  }
 0x104   :  { %1410 = vmatpush3.bf16.msra.mxu1 %v1574_v21  ;;  %1393 = vmatprep.subr.bf16.mxu0 %v1739_v2  ;;  %v680_v40 = vpop.permute.xlu1 %679 }
 0x105   :  { %1411 = vmatprep.subr.bf16.mxu1 %v1739_v2  ;;  %vm681_vm0 = vcmp.eq.s32.totalorder %v680_v40, %v1945_v46 }
 0x106   :  { %v1216_v52 = vsel %vm681_vm0, 1.0, %v1739_v2 }
 0x107   :  { %1394 = vmatpush3.bf16.msra.mxu0 %v1575_v25  ;;  %v684_v54 = vadd.f32 %v1216_v52, %v1215_v51 }
 0x108   :  { %1412 = vmatpush3.bf16.msra.mxu1 %v1576_v27  ;;  %1419 = vmatprep.subr.bf16.mxu0 %v1739_v2 }
 0x109   :  { %1413 = vmatprep.subr.bf16.mxu1 %v1739_v2  ;;  %v801_v43 = vpop.permute.xlu1 %800  ;;  %v691_v61 = vadd.f32 %v1217_v57, %v684_v54  ;;  %v1607_v57 = vld [vmem:[#allocation9 + $0x28] sm:$0xff]  }
 0x10a   :  { %1396 = vmatmul.mubr.bf16.vlgmr.msra.gmra.mrb[4].mxu0 %v438_v31  ;;  %vm802_vm3 = vcmp.eq.s32.totalorder %v801_v43, %v1945_v46 }
 0x10b   :  { %1420 = vmatpush3.bf16.msra.mxu0 %v1577_v30  ;;  %1435 = vmatprep.mubr.msk.bf16.mxu0 %vm1740_vm1, %v1739_v2  ;;  %v1226_v58 = vsel %vm802_vm3, 1.0, %v1739_v2  ;;  %v692_v1 = vpack.c.bf16 %v691_v61, %v691_v61 }
 0x10c   :  { %1414 = vmatpush3.bf16.msra.mxu1 %v1578_v32  ;;  %1421 = vmatprep.subr.bf16.mxu0 %v1739_v2 }
 0x10d   :  { %1439 = vmatprep.subr.bf16.mxu1 %v1739_v2 }
 0x10e   :  { %v807_v50 = vpop.permute.xlu1 %806 }
 0x10f   :  { %1416 = vmatmul.mubr.bf16.vlgmr.msra.gmra.mrb[8].mxu1 %v565_v37  ;;  %1422 = vmatpush3.bf16.msra.mxu0 %v1579_v34  ;;  %vm808_vm4 = vcmp.eq.s32.totalorder %v807_v50, %v1945_v46 }
 0x110   :  { %1440 = vmatpush3.bf16.msra.mxu1 %v1580_v35  ;;  %1423 = vmatprep.subr.bf16.mxu0 %v1739_v2  ;;  %v1227_v59 = vsel %vm808_vm4, 1.0, %v1739_v2 }
 0x111   :  { %1441 = vmatprep.subr.bf16.mxu1 %v1739_v2  ;;  %1455 = vmatprep.mubr.msk.bf16.mxu1 %vm1740_vm1, %v1739_v2  ;;  %v811_v63 = vadd.f32 %v1227_v59, %v1226_v58  ;;  %v1608_v58 = vld [vmem:[#allocation9 + $0x30] sm:$0xff]   ;;  %v1609_v59 = vld [vmem:[#allocation9 + $0x38] sm:$0xff]  }
 0x113   :  { %1424 = vmatpush3.bf16.msra.mxu0 %v1581_v38  ;;  %v818_v4 = vadd.f32 %v1228_v0, %v811_v63 }
 0x114   :  { %1442 = vmatpush3.bf16.msra.mxu1 %v1582_v39  ;;  %1425 = vmatprep.subr.bf16.mxu0 %v1739_v2 }
 0x115   :  { %1443 = vmatprep.subr.bf16.mxu1 %v1739_v2  ;;  %v819_v46 = vpack.c.bf16 %v818_v4, %v818_v4 }
 0x117   :  { %1426 = vmatpush3.bf16.msra.mxu0 %v1583_v41 }
 0x118   :  { %1444 = vmatpush3.bf16.msra.mxu1 %v1584_v42  ;;  %1427 = vmatprep.subr.bf16.mxu0 %v1739_v2 }
 0x119   :  { %1445 = vmatprep.subr.bf16.mxu1 %v1739_v2 }
 0x11b   :  { %1428 = vmatpush3.bf16.msra.mxu0 %v1585_v44 }
 0x11c   :  { %1446 = vmatpush3.bf16.msra.mxu1 %v1586_v45  ;;  %1429 = vmatprep.subr.bf16.mxu0 %v1739_v2 }
 0x11d   :  { %1447 = vmatprep.subr.bf16.mxu1 %v1739_v2 }
 0x11f   :  { %1430 = vmatpush3.bf16.msra.mxu0 %v1587_v48  ;;  %v1237_v48 = vld [vmem:[#allocation6] ss:$0 sm:$0xff] }
 0x120   :  { %1448 = vmatpush3.bf16.msra.mxu1 %v1588_v49  ;;  %1431 = vmatprep.subr.bf16.mxu0 %v1739_v2 }
 0x121   :  { %1449 = vmatprep.subr.bf16.mxu1 %v1739_v2 }
 0x123   :  { %1432 = vmatpush3.bf16.msra.mxu0 %v1589_v53 }
 0x124   :  { %1450 = vmatpush3.bf16.msra.mxu1 %v1590_v56  ;;  %1433 = vmatprep.subr.bf16.mxu0 %v1739_v2  ;;  %v1606_v56 = vld [vmem:[#allocation9 + $0x20] sm:$0xff]  }
 0x125   :  { %1451 = vmatprep.subr.bf16.mxu1 %v1739_v2 }
 0x127   :  { %1434 = vmatpush3.bf16.msra.mxu0 %v1591_v60  ;;  %v1238_v60 = vld [vmem:[%s2056_s6] ss:$0 sm:$0xff] }
 0x128   :  { %1452 = vmatpush3.bf16.msra.mxu1 %v1592_v62  ;;  %1459 = vmatprep.subr.bf16.mxu0 %v1739_v2 }
 0x129   :  { %1453 = vmatprep.subr.bf16.mxu1 %v1739_v2 }
 0x12a   :  { %1436 = vmatmul.mubr.bf16.vlgmr.msra.gmra.mrb[8].mxu0 %v692_v1 }
 0x12b   :  { %1475 = vmatprep.mubr.msk.bf16.mxu0 %vm1740_vm1, %v1739_v2  ;;  %1460 = vmatpush3.bf16.msra.mxu0 %v1594_v9 }
 0x12c   :  { %1454 = vmatpush3.bf16.msra.mxu1 %v1593_v3  ;;  %1461 = vmatprep.subr.bf16.mxu0 %v1739_v2 }
 0x12d   :  { %1479 = vmatprep.subr.bf16.mxu1 %v1739_v2 }
 0x12f   :  { %1456 = vmatmul.mubr.bf16.vlgmr.msra.gmra.mrb[12].mxu1 %v819_v46  ;;  %1462 = vmatpush3.bf16.msra.mxu0 %v1595_v10  ;;  %v1247_v46 = vld [vmem:[%s2058_s8] ss:$0 sm:$0xff] }
 0x130   :  { %1495 = vmatprep.mubr.msk.bf16.mxu1 %vm1740_vm1, %v1739_v2  ;;  %1463 = vmatprep.subr.bf16.mxu0 %v1739_v2 }
 0x131   :  { %1480 = vmatpush3.bf16.msra.mxu1 %v1602_v17 }
 0x132   :  { %1481 = vmatprep.subr.bf16.mxu1 %v1739_v2 }
 0x133   :  { %1464 = vmatpush3.bf16.msra.mxu0 %v1596_v11 }
 0x134   :  { %1465 = vmatprep.subr.bf16.mxu0 %v1739_v2 }
 0x135   :  { %1482 = vmatpush3.bf16.msra.mxu1 %v1603_v18 }
 0x136   :  { %1483 = vmatprep.subr.bf16.mxu1 %v1739_v2 }
 0x137   :  { %1466 = vmatpush3.bf16.msra.mxu0 %v1597_v12 }
 0x138   :  { %1467 = vmatprep.subr.bf16.mxu0 %v1739_v2 }
 0x139   :  { %1484 = vmatpush3.bf16.msra.mxu1 %v1604_v19 }
 0x13a   :  { %1485 = vmatprep.subr.bf16.mxu1 %v1739_v2 }
 0x13b   :  { %v285_v5 = vpop.f32.mrb[0].mxu1  ;;  %1468 = vmatpush3.bf16.msra.mxu0 %v1598_v13 }
 0x13c   :  { %v1357_v6 = vpop.f32.mrb[1].mxu1  ;;  %1469 = vmatprep.subr.bf16.mxu0 %v1739_v2 }
 0x13d   :  { %v288_v7 = vpop.f32.mrb[2].mxu1  ;;  %1486 = vmatpush3.bf16.msra.mxu1 %v1605_v20 }
 0x13e   :  { %v1358_v8 = vpop.f32.mrb[3].mxu1  ;;  %1487 = vmatprep.subr.bf16.mxu1 %v1739_v2 }
 0x13f   :  { %1470 = vmatpush3.bf16.msra.mxu0 %v1599_v14 }
 0x140   :  { %1471 = vmatprep.subr.bf16.mxu0 %v1739_v2 }
 0x141   :  { %1488 = vmatpush3.bf16.msra.mxu1 %v1606_v56 }
 0x142   :  { %1489 = vmatprep.subr.bf16.mxu1 %v1739_v2 }
 0x143   :  { %1472 = vmatpush3.bf16.msra.mxu0 %v1600_v15 }
 0x144   :  { %1473 = vmatprep.subr.bf16.mxu0 %v1739_v2 }
 0x145   :  { %1490 = vmatpush3.bf16.msra.mxu1 %v1607_v57 }
 0x146   :  { %1491 = vmatprep.subr.bf16.mxu1 %v1739_v2 }
 0x147   :  { %1474 = vmatpush3.bf16.msra.mxu0 %v1601_v16 }
 0x149   :  { %1492 = vmatpush3.bf16.msra.mxu1 %v1608_v58 }
 0x14a   :  { %1493 = vmatprep.subr.bf16.mxu1 %v1739_v2 }
 0x14d   :  { %1494 = vmatpush3.bf16.msra.mxu1 %v1609_v59 }
 0x1bd   :  { %v228_v21 = vpop.f32.mrb[0].mxu0 }
 0x1be   :  { %v286_v22 = vadd.f32 %v285_v5, %v228_v21  ;;  %v1349_v23 = vpop.f32.mrb[1].mxu0 }
 0x1bf   :  { %v231_v24 = vpop.f32.mrb[2].mxu0 }
 0x1c0   :  { %v1350_v25 = vpop.f32.mrb[3].mxu0 }
 0x1c2   :  { %v411_v26 = vpop.f32.mrb[4].mxu1 }
 0x1c3   :  { %v417_v27 = vadd.f32 %v411_v26, %v286_v22  ;;  %v1377_v28 = vpop.f32.mrb[5].mxu1 }
 0x1c4   :  { %v414_v29 = vpop.f32.mrb[6].mxu1 }
 0x1c5   :  { %v1378_v30 = vpop.f32.mrb[7].mxu1 }
 0x1dd   :  { %v538_v31 = vpop.f32.mrb[4].mxu0 }
 0x1de   :  { %v544_v32 = vadd.f32 %v538_v31, %v417_v27  ;;  %v1397_v33 = vpop.f32.mrb[5].mxu0 }
 0x1df   :  { %v541_v34 = vpop.f32.mrb[6].mxu0 }
 0x1e0   :  { %v1398_v35 = vpop.f32.mrb[7].mxu0 }
 0x1e2   :  { %v665_v36 = vpop.f32.mrb[8].mxu1 }
 0x1e3   :  { %v671_v37 = vadd.f32 %v665_v36, %v544_v32  ;;  %v1417_v38 = vpop.f32.mrb[9].mxu1 }
 0x1e4   :  { %v668_v39 = vpop.f32.mrb[10].mxu1 }
 0x1e5   :  { %v1418_v40 = vpop.f32.mrb[11].mxu1 }
 0x1fd   :  { %v792_v41 = vpop.f32.mrb[8].mxu0 }
 0x1fe   :  { %v798_v42 = vadd.f32 %v792_v41, %v671_v37  ;;  %v1437_v43 = vpop.f32.mrb[9].mxu0 }
 0x1ff   :  { %v795_v44 = vpop.f32.mrb[10].mxu0 }
 0x200   :  { %v1438_v45 = vpop.f32.mrb[11].mxu0 }
 0x202   :  { %v919_v47 = vpop.f32.mrb[12].mxu1 }
 0x203   :  { %v925_v49 = vadd.f32 %v919_v47, %v798_v42  ;;  %v1457_v50 = vpop.f32.mrb[13].mxu1 }
 0x204   :  { %v922_v51 = vpop.f32.mrb[14].mxu1 }
 0x205   :  { %v933_v52 = vadd.f32 %v1237_v48, %v925_v49  ;;  %v1458_v53 = vpop.f32.mrb[15].mxu1 }
 0x207   :  { %1610 = vtanh.f32 %v933_v52 }
 0x211   :  { %v1611_v54 = vpop.eup %1610 }
 0x212   :  { %v935_v55 = vpack.c.bf16 %v1611_v54, %v1611_v54 }
 0x214   :  { %1476 = vmatmul.mubr.bf16.vlgmr.msra.gmra.mrb[12].mxu0 %v935_v55 }
 0x2e7   :  { %v1041_v61 = vpop.f32.mrb[12].mxu0 }
 0x2e8   :  { %v1042_v62 = vadd.f32 %v1238_v60, %v1041_v61  ;;  %v1477_v63 = vpop.f32.mrb[13].mxu0 }
 0x2e9   :  { %v1044_v0 = vpop.f32.mrb[14].mxu0 }
 0x2ea   :  { %1612 = vtanh.f32 %v1042_v62  ;;  %v1478_v1 = vpop.f32.mrb[15].mxu0 }
 0x2f4   :  { %v1613_v3 = vpop.eup %1612 }
 0x2f5   :  { %v1048_v4 = vpack.c.bf16 %v1613_v3, %v1613_v3 }
 0x2f7   :  { %1496 = vmatmul.mubr.bf16.vlgmr.msra.gmra.mrb[16].mxu1 %v1048_v4 }
 0x3ca   :  { %v1154_v2 = vpop.f32.mrb[16].mxu1 }
 0x3cb   :  { %v1155_v5 = vadd.f32 %v1247_v46, %v1154_v2  ;;  %v1497_v6 = vpop.f32.mrb[17].mxu1 }
 0x3cc   :  { %v1157_v7 = vpop.f32.mrb[18].mxu1 }
 0x3cd   :  { %1160 = vst [vmem:[%s2059_s9] sm:$0xf] %v1155_v5  ;;  %v1498_v8 = vpop.f32.mrb[19].mxu1 }
 0x3ce   :  { %1165 = vsyncpa [#allocation3], 1 }
 0x3cf   :  { %1166 = vsyncpa [#allocation5], 1 }
 0x3d0   :  { %1167 = vsyncpa [#allocation8], 1 }

</bundles_post_ra>
